<compile_context>
chip_gen: v7x
topology: tpu7x:2x2x1
jax: 0.10.0
libtpu: 0.0.40
codegen_flags: <defaults>
</compile_context>

<pallas_src>
import jax
import jax.numpy as jnp
from jax import lax
from jax.experimental import pallas as pl
from jax.experimental.pallas import tpu as pltpu

# ------------------------- hyper-parameters (small) -------------------------
N = 4          # batch size
C = 8          # image channels
H = W = 8      # spatial size
HIDDEN = 32    # encoder hidden width
DIM = 32       # feature dimension ("dim" in MoCo)
R = 64         # queue size ("r" in MoCo)
M = 0.9        # key-encoder momentum
T = 0.7        # softmax temperature

# Mirrors MoCo's `assert self.r % batch_size == 0`; with ptr starting at 0 the
# in-kernel enqueue slice therefore never wraps around.
assert R % N == 0, "queue size must be divisible by batch size"

LANE_PAD = ((1 + R + 127) // 128) * 128   # lane-dense padded logits width

_VMEM = pl.BlockSpec(memory_space=pltpu.MemorySpace.VMEM)
_SMEM = pl.BlockSpec(memory_space=pltpu.MemorySpace.SMEM)


# ------------------------------ fused kernel ---------------------------------
def moco_fused_kernel(ptr_ref, x_ref,
                      w1q_ref, b1q_ref, w2q_ref, b2q_ref,
                      w1k_ref, b1k_ref, w2k_ref, b2k_ref,
                      queue_ref,
                      logits_ref, q_out_ref, queue_out_ref):
    """Fused MoCo forward.

    ptr_ref      : SMEM (1,) int32   queue pointer
    x_ref        : (2N, C, H*W)      stacked [im_q ; im_k], spatial flattened
    queue_ref    : (R, DIM)          negatives, one per row (transposed vs torch)
    logits_ref   : (N, LANE_PAD)     cols 0..R hold [l_pos | l_neg] / T, rest 0
    q_out_ref    : (N, DIM)          normalized query features (student_key)
    queue_out_ref: (R, DIM)          queue with new keys at ptr (aliased input)
    """
    nb = x_ref.shape[0] // 2

    # Global average pool over the trailing (lane) axis: (2N, C, HW) -> (2N, C).
    pooled = jnp.mean(x_ref[...], axis=-1)

    def head(p, w1_ref, b1_ref, w2_ref, b2_ref):
        h = jnp.dot(p, w1_ref[...], preferred_element_type=jnp.float32) + b1_ref[...]
        h = jnp.maximum(h, 0.0)                                           # ReLU
        f = jnp.dot(h, w2_ref[...], preferred_element_type=jnp.float32) + b2_ref[...]
        # F.normalize(dim=1): f / max(||f||, 1e-12) == f * rsqrt(max(||f||^2, 1e-24))
        ss = jnp.sum(f * f, axis=1, keepdims=True)
        return f * lax.rsqrt(jnp.maximum(ss, 1e-24))

    q = head(pooled[:nb, :], w1q_ref, b1q_ref, w2q_ref, b2q_ref)          # (N, DIM)
    k = head(pooled[nb:, :], w1k_ref, b1k_ref, w2k_ref, b2k_ref)          # (N, DIM)
    q_out_ref[...] = q

    # logits: l_pos = per-row q.k ; l_neg = q @ queue^T (dot_general contracts
    # the DIM axes -> MXU takes the transposed operand for free).
    l_pos = jnp.sum(q * k, axis=1, keepdims=True)                         # (N, 1)
    l_neg = lax.dot_general(q, queue_ref[...],
                            (((1,), (1,)), ((), ())),
                            preferred_element_type=jnp.float32)           # (N, R)
    inv_t = 1.0 / T
    logits_ref[...] = jnp.zeros_like(logits_ref)     # full-width unmasked store
    logits_ref[:, 0:1] = l_pos * inv_t
    logits_ref[:, 1:1 + R] = l_neg * inv_t

    # dequeue/enqueue: copy old queue, overwrite N rows at ptr with the new keys.
    queue_out_ref[...] = queue_ref[...]
    ptr = ptr_ref[0]
    queue_out_ref[pl.ds(ptr, nb), :] = k


# ------------------------------ wrappers --------------------------------------
def init_params(key):
    k1, k2, k3, k4 = jax.random.split(key, 4)
    return {
        "w1": jax.random.normal(k1, (C, HIDDEN), jnp.float32) * 0.1,
        "b1": jax.random.normal(k2, (1, HIDDEN), jnp.float32) * 0.01,
        "w2": jax.random.normal(k3, (HIDDEN, DIM), jnp.float32) * 0.1,
        "b2": jax.random.normal(k4, (1, DIM), jnp.float32) * 0.01,
    }


@jax.jit
def moco_forward(params_q, params_k, queue, queue_ptr, im_q, im_k):
    """Training-mode forward (is_eval=False, cluster_result=None).

    Returns (logits, labels, student_key, new_queue, new_queue_ptr, new_params_k).
    """
    # --- momentum update of key encoder: param_k = m*param_k + (1-m)*param_q
    params_k = jax.tree_util.tree_map(lambda pk, pq: pk * M + pq * (1.0 - M),
                                      params_k, params_q)

    # Shuffle-BN omitted: the synthesized encoder has no BatchNorm, so
    # encoder_k(shuffle(x))[unshuffle] == encoder_k(x) exactly (row-wise ops).

    n, c, h, w = im_q.shape
    x = jnp.concatenate([im_q, im_k], axis=0).reshape(2 * n, c, h * w)

    logits_pad, q, new_queue = pl.pallas_call(
        moco_fused_kernel,
        out_shape=(
            jax.ShapeDtypeStruct((n, LANE_PAD), jnp.float32),   # padded logits
            jax.ShapeDtypeStruct((n, DIM), jnp.float32),        # student_key
            jax.ShapeDtypeStruct((R, DIM), jnp.float32),        # updated queue
        ),
        in_specs=[_SMEM] + [_VMEM] * 10,
        out_specs=(_VMEM, _VMEM, _VMEM),
        # queue (input 10) aliases the updated queue (output 2): the enqueue
        # happens in-kernel instead of a full-queue dynamic_update_slice.
        input_output_aliases={10: 2},
    )(queue_ptr, x,
      params_q["w1"], params_q["b1"], params_q["w2"], params_q["b2"],
      params_k["w1"], params_k["b1"], params_k["w2"], params_k["b2"],
      queue)

    logits = logits_pad[:, :1 + R]
    # TODO(synk): torch uses int64 labels; JAX default integer dtype is int32.
    labels = jnp.zeros((n,), dtype=jnp.int32)
    new_ptr = ((queue_ptr + n) % R).astype(jnp.int32)

    # cluster_result is None -> proto_logits / proto_labels are None (omitted).
    return logits, labels, q, new_queue, new_ptr, params_k


# --------------------------------- main ----------------------------------------
if __name__ == "__main__":
    root = jax.random.PRNGKey(0)
    k_params, k_queue, k_imq, k_imk = jax.random.split(root, 4)

    # encoder_q params; encoder_k initialized as a copy (as in __init__)
    params_q = init_params(k_params)
    params_k = jax.tree_util.tree_map(lambda p: p.copy(), params_q)

    # queue stored row-major as (R, DIM) (transposed layout vs torch's (dim, r));
    # each row L2-normalized, matching normalize(randn(dim, r), dim=0).T.
    queue = jax.random.normal(k_queue, (R, DIM), jnp.float32)
    queue = queue * lax.rsqrt(jnp.maximum(
        jnp.sum(queue * queue, axis=1, keepdims=True), 1e-24))
    queue_ptr = jnp.zeros((1,), dtype=jnp.int32)

    im_q = jax.random.normal(k_imq, (N, C, H, W), jnp.float32)
    im_k = jax.random.normal(k_imk, (N, C, H, W), jnp.float32)

    out = moco_forward(params_q, params_k, queue, queue_ptr, im_q, im_k)
    logits, labels, student_key, new_queue, new_ptr, new_params_k = out
    jax.block_until_ready((logits, labels, student_key, new_queue, new_ptr))

    assert logits.shape == (N, 1 + R) and logits.dtype == jnp.float32
    assert labels.shape == (N,)
    assert student_key.shape == (N, DIM)
    assert new_queue.shape == (R, DIM)
    assert int(new_ptr[0]) == N % R
    print("KERNEL_OK")
</pallas_src>

<mosaic_0001>
module attributes {stable_mosaic.version = 11 : i64} {
  func.func @moco_fused_kernel(%arg0: memref<1xi32, #tpu.memory_space<smem>>, %arg1: memref<8x8x64xf32, #tpu.memory_space<vmem>>, %arg2: memref<8x32xf32, #tpu.memory_space<vmem>>, %arg3: memref<1x32xf32, #tpu.memory_space<vmem>>, %arg4: memref<32x32xf32, #tpu.memory_space<vmem>>, %arg5: memref<1x32xf32, #tpu.memory_space<vmem>>, %arg6: memref<8x32xf32, #tpu.memory_space<vmem>>, %arg7: memref<1x32xf32, #tpu.memory_space<vmem>>, %arg8: memref<32x32xf32, #tpu.memory_space<vmem>>, %arg9: memref<1x32xf32, #tpu.memory_space<vmem>>, %arg10: memref<64x32xf32, #tpu.memory_space<vmem>>, %arg11: memref<4x128xf32, #tpu.memory_space<vmem>>, %arg12: memref<4x32xf32, #tpu.memory_space<vmem>>, %arg13: memref<64x32xf32, #tpu.memory_space<vmem>>) attributes {dimension_semantics = [], scalar_prefetch = 0 : i64, scratch_operands = 0 : i64, tpu.core_type = #tpu.core_type<tc>} {
    %c0 = arith.constant 0 : index
    %c0_0 = arith.constant 0 : index
    %c0_1 = arith.constant 0 : index
    %0 = vector.load %arg1[%c0, %c0_0, %c0_1] : memref<8x8x64xf32, #tpu.memory_space<vmem>>, vector<8x8x64xf32>
    %cst = arith.constant dense<0.000000e+00> : vector<8x8xf32>
    %1 = vector.multi_reduction <add>, %0, %cst [2] : vector<8x8x64xf32> to vector<8x8xf32>
    %cst_2 = arith.constant 6.400000e+01 : f32
    %2 = vector.broadcast %cst_2 : f32 to vector<8x8xf32>
    %3 = arith.divf %1, %2 : vector<8x8xf32>
    %4 = vector.extract_strided_slice %3 {offsets = [0, 0], sizes = [4, 8], strides = [1, 1]} : vector<8x8xf32> to vector<4x8xf32>
    %c0_3 = arith.constant 0 : index
    %c0_4 = arith.constant 0 : index
    %5 = vector.load %arg2[%c0_3, %c0_4] : memref<8x32xf32, #tpu.memory_space<vmem>>, vector<8x32xf32>
    %cst_5 = arith.constant dense<0.000000e+00> : vector<4x32xf32>
    %6 = tpu.matmul %4, %5, %cst_5 {dimension_numbers = #tpu.dot_dimension_numbers<[1], [0], [0], [1], [0, 0, 1, 1], [], []>} : vector<4x8xf32>, vector<8x32xf32>, vector<4x32xf32> -> vector<4x32xf32>
    %c0_6 = arith.constant 0 : index
    %c0_7 = arith.constant 0 : index
    %7 = vector.load %arg3[%c0_6, %c0_7] : memref<1x32xf32, #tpu.memory_space<vmem>>, vector<1x32xf32>
    %8 = vector.broadcast %7 : vector<1x32xf32> to vector<4x32xf32>
    %9 = arith.addf %6, %8 : vector<4x32xf32>
    %cst_8 = arith.constant 0.000000e+00 : f32
    %10 = vector.broadcast %cst_8 : f32 to vector<4x32xf32>
    %11 = arith.maximumf %9, %10 : vector<4x32xf32>
    %c0_9 = arith.constant 0 : index
    %c0_10 = arith.constant 0 : index
    %12 = vector.load %arg4[%c0_9, %c0_10] : memref<32x32xf32, #tpu.memory_space<vmem>>, vector<32x32xf32>
    %cst_11 = arith.constant dense<0.000000e+00> : vector<4x32xf32>
    %13 = tpu.matmul %11, %12, %cst_11 {dimension_numbers = #tpu.dot_dimension_numbers<[1], [0], [0], [1], [0, 0, 1, 1], [], []>} : vector<4x32xf32>, vector<32x32xf32>, vector<4x32xf32> -> vector<4x32xf32>
    %c0_12 = arith.constant 0 : index
    %c0_13 = arith.constant 0 : index
    %14 = vector.load %arg5[%c0_12, %c0_13] : memref<1x32xf32, #tpu.memory_space<vmem>>, vector<1x32xf32>
    %15 = vector.broadcast %14 : vector<1x32xf32> to vector<4x32xf32>
    %16 = arith.addf %13, %15 : vector<4x32xf32>
    %17 = arith.mulf %16, %16 : vector<4x32xf32>
    %cst_14 = arith.constant dense<0.000000e+00> : vector<4xf32>
    %18 = vector.multi_reduction <add>, %17, %cst_14 [1] : vector<4x32xf32> to vector<4xf32>
    %19 = vector.shape_cast %18 : vector<4xf32> to vector<4x1xf32>
    %cst_15 = arith.constant 1.000000e-24 : f32
    %20 = vector.broadcast %cst_15 : f32 to vector<4x1xf32>
    %21 = arith.maximumf %19, %20 : vector<4x1xf32>
    %22 = math.rsqrt %21 : vector<4x1xf32>
    %23 = vector.broadcast %22 : vector<4x1xf32> to vector<4x32xf32>
    %24 = arith.mulf %16, %23 : vector<4x32xf32>
    %25 = vector.extract_strided_slice %3 {offsets = [4, 0], sizes = [4, 8], strides = [1, 1]} : vector<8x8xf32> to vector<4x8xf32>
    %c0_16 = arith.constant 0 : index
    %c0_17 = arith.constant 0 : index
    %26 = vector.load %arg6[%c0_16, %c0_17] : memref<8x32xf32, #tpu.memory_space<vmem>>, vector<8x32xf32>
    %cst_18 = arith.constant dense<0.000000e+00> : vector<4x32xf32>
    %27 = tpu.matmul %25, %26, %cst_18 {dimension_numbers = #tpu.dot_dimension_numbers<[1], [0], [0], [1], [0, 0, 1, 1], [], []>} : vector<4x8xf32>, vector<8x32xf32>, vector<4x32xf32> -> vector<4x32xf32>
    %c0_19 = arith.constant 0 : index
    %c0_20 = arith.constant 0 : index
    %28 = vector.load %arg7[%c0_19, %c0_20] : memref<1x32xf32, #tpu.memory_space<vmem>>, vector<1x32xf32>
    %29 = vector.broadcast %28 : vector<1x32xf32> to vector<4x32xf32>
    %30 = arith.addf %27, %29 : vector<4x32xf32>
    %cst_21 = arith.constant 0.000000e+00 : f32
    %31 = vector.broadcast %cst_21 : f32 to vector<4x32xf32>
    %32 = arith.maximumf %30, %31 : vector<4x32xf32>
    %c0_22 = arith.constant 0 : index
    %c0_23 = arith.constant 0 : index
    %33 = vector.load %arg8[%c0_22, %c0_23] : memref<32x32xf32, #tpu.memory_space<vmem>>, vector<32x32xf32>
    %cst_24 = arith.constant dense<0.000000e+00> : vector<4x32xf32>
    %34 = tpu.matmul %32, %33, %cst_24 {dimension_numbers = #tpu.dot_dimension_numbers<[1], [0], [0], [1], [0, 0, 1, 1], [], []>} : vector<4x32xf32>, vector<32x32xf32>, vector<4x32xf32> -> vector<4x32xf32>
    %c0_25 = arith.constant 0 : index
    %c0_26 = arith.constant 0 : index
    %35 = vector.load %arg9[%c0_25, %c0_26] : memref<1x32xf32, #tpu.memory_space<vmem>>, vector<1x32xf32>
    %36 = vector.broadcast %35 : vector<1x32xf32> to vector<4x32xf32>
    %37 = arith.addf %34, %36 : vector<4x32xf32>
    %38 = arith.mulf %37, %37 : vector<4x32xf32>
    %cst_27 = arith.constant dense<0.000000e+00> : vector<4xf32>
    %39 = vector.multi_reduction <add>, %38, %cst_27 [1] : vector<4x32xf32> to vector<4xf32>
    %40 = vector.shape_cast %39 : vector<4xf32> to vector<4x1xf32>
    %cst_28 = arith.constant 1.000000e-24 : f32
    %41 = vector.broadcast %cst_28 : f32 to vector<4x1xf32>
    %42 = arith.maximumf %40, %41 : vector<4x1xf32>
    %43 = math.rsqrt %42 : vector<4x1xf32>
    %44 = vector.broadcast %43 : vector<4x1xf32> to vector<4x32xf32>
    %45 = arith.mulf %37, %44 : vector<4x32xf32>
    %c0_29 = arith.constant 0 : index
    %c0_30 = arith.constant 0 : index
    %46 = vector.load %arg12[%c0_29, %c0_30] : memref<4x32xf32, #tpu.memory_space<vmem>>, vector<4x32xf32>
    tpu.vector_store %arg12[%c0_29, %c0_30], %24 {strides = array<i32>} : memref<4x32xf32, #tpu.memory_space<vmem>>, vector<4x32xf32>,
    %47 = arith.mulf %24, %45 : vector<4x32xf32>
    %cst_31 = arith.constant dense<0.000000e+00> : vector<4xf32>
    %48 = vector.multi_reduction <add>, %47, %cst_31 [1] : vector<4x32xf32> to vector<4xf32>
    %49 = vector.shape_cast %48 : vector<4xf32> to vector<4x1xf32>
    %c0_32 = arith.constant 0 : index
    %c0_33 = arith.constant 0 : index
    %50 = vector.load %arg10[%c0_32, %c0_33] : memref<64x32xf32, #tpu.memory_space<vmem>>, vector<64x32xf32>
    %cst_34 = arith.constant dense<0.000000e+00> : vector<4x64xf32>
    %51 = tpu.matmul %24, %50, %cst_34 {dimension_numbers = #tpu.dot_dimension_numbers<[1], [1], [0], [0], [0, 0, 1, 0], [], []>} : vector<4x32xf32>, vector<64x32xf32>, vector<4x64xf32> -> vector<4x64xf32>
    %cst_35 = arith.constant 0.000000e+00 : f32
    %52 = vector.broadcast %cst_35 : f32 to vector<4x128xf32>
    %c0_36 = arith.constant 0 : index
    %c0_37 = arith.constant 0 : index
    %53 = vector.load %arg11[%c0_36, %c0_37] : memref<4x128xf32, #tpu.memory_space<vmem>>, vector<4x128xf32>
    tpu.vector_store %arg11[%c0_36, %c0_37], %52 {strides = array<i32>} : memref<4x128xf32, #tpu.memory_space<vmem>>, vector<4x128xf32>,
    %cst_38 = arith.constant 1.42857146 : f32
    %54 = vector.broadcast %cst_38 : f32 to vector<4x1xf32>
    %55 = arith.mulf %49, %54 : vector<4x1xf32>
    %c0_39 = arith.constant 0 : index
    %c0_40 = arith.constant 0 : index
    %56 = vector.load %arg11[%c0_39, %c0_40] : memref<4x128xf32, #tpu.memory_space<vmem>>, vector<4x1xf32>
    tpu.vector_store %arg11[%c0_39, %c0_40], %55 {strides = array<i32>} : memref<4x128xf32, #tpu.memory_space<vmem>>, vector<4x1xf32>,
    %cst_41 = arith.constant 1.42857146 : f32
    %57 = vector.broadcast %cst_41 : f32 to vector<4x64xf32>
    %58 = arith.mulf %51, %57 : vector<4x64xf32>
    %c0_42 = arith.constant 0 : index
    %c1 = arith.constant 1 : index
    %59 = vector.load %arg11[%c0_42, %c1] : memref<4x128xf32, #tpu.memory_space<vmem>>, vector<4x64xf32>
    tpu.vector_store %arg11[%c0_42, %c1], %58 {strides = array<i32>} : memref<4x128xf32, #tpu.memory_space<vmem>>, vector<4x64xf32>,
    %c0_43 = arith.constant 0 : index
    %c0_44 = arith.constant 0 : index
    %60 = vector.load %arg10[%c0_43, %c0_44] : memref<64x32xf32, #tpu.memory_space<vmem>>, vector<64x32xf32>
    %c0_45 = arith.constant 0 : index
    %c0_46 = arith.constant 0 : index
    %61 = vector.load %arg13[%c0_45, %c0_46] : memref<64x32xf32, #tpu.memory_space<vmem>>, vector<64x32xf32>
    tpu.vector_store %arg13[%c0_45, %c0_46], %60 {strides = array<i32>} : memref<64x32xf32, #tpu.memory_space<vmem>>, vector<64x32xf32>,
    %c0_47 = arith.constant 0 : index
    %62 = memref.load %arg0[%c0_47] : memref<1xi32, #tpu.memory_space<smem>>
    %63 = arith.index_cast %62 : i32 to index
    %c0_48 = arith.constant 0 : index
    %64 = vector.load %arg13[%63, %c0_48] : memref<64x32xf32, #tpu.memory_space<vmem>>, vector<4x32xf32>
    tpu.vector_store %arg13[%63, %c0_48], %45 {strides = array<i32>} : memref<64x32xf32, #tpu.memory_space<vmem>>, vector<4x32xf32>,
    return
  }
}

</mosaic_0001>

<bundles_post_ra>
// kernel: moco_forward.1
= control target key start
LH: loop header
LB: loop body
LE: loop exit
PB: predicated region body
PF: predicated region fallthrough
CT: control target
= control target key end

     0   :  { %20 = vsyncpa [#allocation4], 0  ;;  %vm52_vm0 = vcmask 523264   ;;  %s1121_s0 = inlined_call_operand.<no memory space> [shape: s32[1], index: 0, kind: input, shape index: {}]   ;;  %s1122_s1 = inlined_call_operand.vmem [shape: f32[8,8,64], index: 1, kind: input, shape index: {}]   ;;  %s1123_s2 = inlined_call_operand.vmem [shape: f32[8,32], index: 2, kind: input, shape index: {}]   ;;  %s1124_s3 = inlined_call_operand.vmem [shape: f32[1,32], index: 3, kind: input, shape index: {}]   ;;  %s1125_s4 = inlined_call_operand.vmem [shape: f32[32,32], index: 4, kind: input, shape index: {}]   ;;  %s1126_s5 = inlined_call_operand.vmem [shape: f32[1,32], index: 5, kind: input, shape index: {}]   ;;  %s1127_s6 = inlined_call_operand.vmem [shape: f32[8,32], index: 6, kind: input, shape index: {}]   ;;  %s1128_s7 = inlined_call_operand.vmem [shape: f32[1,32], index: 7, kind: input, shape index: {}]   ;;  %s1129_s8 = inlined_call_operand.vmem [shape: f32[32,32], index: 8, kind: input, shape index: {}]   ;;  %s1130_s9 = inlined_call_operand.vmem [shape: f32[1,32], index: 9, kind: input, shape index: {}]   ;;  %s1131_s10 = inlined_call_operand.vmem [shape: f32[64,32], index: 10, kind: input, shape index: {}, may-alias: {10,13}]   ;;  %s1132_s11 = inlined_call_operand.hbm [shape: f32[4,128], index: 11, kind: output, shape index: {0}]   ;;  %s1133_s12 = inlined_call_operand.hbm [shape: f32[4,32], index: 12, kind: output, shape index: {1}]   ;;  %s1134_s13 = inlined_call_operand.vmem [shape: f32[64,32], index: 13, kind: output, shape index: {2}, may-alias: {10,13}]  }
   0x1   :  { %v44_v0 = vld [vmem:[%s1122_s1] sm:$0xff]  ;;  %v46_v1 = vld [vmem:[%s1122_s1 + $0x10] sm:$0xff]  ;;  %v45_v2 = vld [vmem:[%s1122_s1 + $0x8] sm:$0xff] }
   0x2   :  { %v53_v3 = vsel %vm52_vm0, %v44_v0, 0.0  ;;  %v59_v4 = vsel %vm52_vm0, %v46_v1, 0.0  ;;  %v47_v5 = vld [vmem:[%s1122_s1 + $0x18] sm:$0xff] }
   0x3   :  { %21 = vsyncpa [#allocation6], 0  ;;  %54 = vadd.xlane.f32.xlu0 %v53_v3  ;;  %60 = vadd.xlane.f32.xlu1 %v59_v4  ;;  %v56_v6 = vsel %vm52_vm0, %v45_v2, 0.0  ;;  %v62_v7 = vsel %vm52_vm0, %v47_v5, 0.0  ;;  %v86_v8 = vld [vmem:[%s1123_s2] sm:$0xff]  ;;  %v834_v9 = vmov 0.0   ;;  %v98_v19 = vlaneseq }
   0x4   :  { %697 = vmatprep.subr.mxu0 %v834_v9  ;;  %594 = vst [vmem:[#allocation3] sm:$0xf] %v834_v9  ;;  %vm835_vm1 = vmmov 0   ;;  %v48_v10 = vld [vmem:[%s1122_s1 + $0x20] sm:$0xff]  ;;  %v49_v11 = vld [vmem:[%s1122_s1 + $0x28] sm:$0xff]  ;;  %v50_v12 = vld [vmem:[%s1122_s1 + $0x30] sm:$0xff] }
   0x5   :  { %699 = vmatprep.mubr.msk.f32.mxu0 %vm835_vm1, %v834_v9  ;;  %698 = vmatpush3.msra.mxu0 %v86_v8  ;;  %v65_v13 = vsel %vm52_vm0, %v48_v10, 0.0  ;;  %v68_v14 = vsel %vm52_vm0, %v49_v11, 0.0  ;;  %v51_v15 = vld [vmem:[%s1122_s1 + $0x38] sm:$0xff]  ;;  %v71_v16 = vsel %vm52_vm0, %v50_v12, 0.0  ;;  %v836_v18 = vmov 0.0|0.0   ;;  %v196_v31 = vld [vmem:[%s1125_s4] sm:$0xff] }
   0x6   :  { %745 = vmatprep.mubr.msk.f32.mxu1 %vm835_vm1, %v834_v9  ;;  %v74_v17 = vsel %vm52_vm0, %v51_v15, 0.0  ;;  %748 = vmatprep.subr.bf16.mxu0 %v836_v18  ;;  %v99_v20 = vand.u32 127, %v98_v19  ;;  %v101_v21 = vshrl.u32 %v98_v19, 7  ;;  %vm116_vm2 = vcmask 1041409   ;;  %v197_v32 = vld [vmem:[%s1125_s4 + $0x8] sm:$0xff]  ;;  %v198_v54 = vld [vmem:[%s1125_s4 + $0x10] sm:$0xff] }
   0x7   :  { %57 = vadd.xlane.f32.xlu0 %v56_v6  ;;  %63 = vadd.xlane.f32.xlu1 %v62_v7  ;;  %vm118_vm3 = vcmask 1042434   ;;  %vm120_vm4 = vcmask 1043459   ;;  %vm122_vm5 = vcmask 64512   ;;  %v749_v38 = vpack.c.bf16 %v197_v32, %v196_v31  ;;  %v199_v55 = vld [vmem:[%s1125_s4 + $0x18] sm:$0xff]  ;;  %v657_v59 = vld [vmem:[%s1124_s3] ss:$0 sm:$0xff]  ;;  %s622_s4 = scalar_lea.vmem %s1134_s13, %s1121_s0 }
   0x8   :  { %760 = vmatprep.subr.bf16.mxu1 %v836_v18  ;;  %v102_v24 = vsub.s32 %v99_v20, %v101_v21  ;;  %v752_v56 = vpack.c.bf16 %v199_v55, %v198_v54  ;;  %vm207_vm6 = vcmask 261120   ;;  %v289_v0 = vld [vmem:[%s1127_s6] sm:$0xff]  ;;  %v394_v2 = vld [vmem:[%s1129_s8 + $0x8] sm:$0xff]  ;;  %v395_v4 = vld [vmem:[%s1129_s8 + $0x10] sm:$0xff]  ;;  %vm282_vm8 = vcmask 257024   ;;  %s837_s16 = smov 1  }
   0x9   :  { %v393_v1 = vld [vmem:[%s1129_s8] sm:$0xff]  ;;  %v396_v5 = vld [vmem:[%s1129_s8 + $0x18] sm:$0xff]  ;;  %v490_v8 = vld [vmem:[%s1131_s10 + $0x8] sm:$0xff]  ;;  %s838_s19 = smov [#allocation5]  }
   0xa   :  { %v755_v3 = vpack.c.bf16 %v394_v2, %v393_v1  ;;  %v758_v6 = vpack.c.bf16 %v396_v5, %v395_v4  ;;  %v489_v7 = vld [vmem:[%s1131_s10] sm:$0xff]  ;;  %vm1010_vm7 = vmpackc.low %vm207_vm6, %vm207_vm6  ;;  %s640_s20 = sshll.u32 %s838_s19, 4  ;;  %s641_s20 = int_to_ptr.vmem [resolvable:$true] %s640_s20 }
   0xb   :  { %66 = vadd.xlane.f32.xlu0 %v65_v13  ;;  %69 = vadd.xlane.f32.xlu1 %v68_v14  ;;  %v761_v10 = vpack.c.bf16 %v490_v8, %v489_v7  ;;  %613 = vst.msk [vmem:[%s1134_s13] sm:$0xff] %vm207_vm6, %v489_v7  ;;  %614 = vst.msk [vmem:[%s1134_s13 + $0x8] sm:$0xff] %vm207_vm6, %v490_v8  ;;  %v659_v14 = vld [vmem:[%s1126_s5] ss:$0 sm:$0xff]  ;;  %s786_s6 = scalar_lea.vmem %s641_s20, 64  ;;  %p791_p1 = scmp.lt.s32.totalorder %s641_s20, %s641_s20 }
   0xc   :  { %v661_v19 = vld [vmem:[%s1128_s7] ss:$0 sm:$0xff]  ;;  %p787_p0 = scmp.ne.s32.totalorder %s641_s20, %s786_s6  ;;  %p792_p2 = scmp.lt.s32.totalorder %s786_s6, %s786_s6 }
   0xd   :  { %763 = vmatpush3.bf16.xpose.msk.msra.mxu1 %vm1010_vm7, %v761_v10 }
   0xe   :  { %764 = vmatprep.subr.bf16.mxu1 %v836_v18  ;;  %p793_p3 = por %p792_p2, %p791_p1 }
   0xf   :  { %72 = vadd.xlane.f32.xlu0 %v71_v16  ;;  %75 = vadd.xlane.f32.xlu1 %v74_v17 }
  0x10   :  { %p794_p4 = pnand %p793_p3, %p787_p0 }
  0x12   :  { %v491_v11 = vld [vmem:[%s1131_s10 + $0x10] sm:$0xff]  ;;  %v492_v12 = vld [vmem:[%s1131_s10 + $0x18] sm:$0xff] }
  0x13   :  { %615 = vst.msk [vmem:[%s1134_s13 + $0x10] sm:$0xff] %vm207_vm6, %v491_v11  ;;  %616 = vst.msk [vmem:[%s1134_s13 + $0x18] sm:$0xff] %vm207_vm6, %v492_v12  ;;  %v765_v13 = vpack.c.bf16 %v492_v12, %v491_v11 }
  0x15   :  { %767 = vmatpush3.bf16.xpose.msk.msra.mxu1 %vm1010_vm7, %v765_v13 }
  0x16   :  { %768 = vmatprep.subr.bf16.mxu1 %v836_v18 }
  0x90   :  { %v55_v22 = vpop.xlane.xlu0 %54  ;;  %v61_v23 = vpop.xlane.xlu1 %60 }
  0x91   :  { %v78_v25 = vmul.f32 0.015625, %v55_v22  ;;  %v80_v26 = vmul.f32 0.015625, %v61_v23 }
  0x93   :  { %v103_v33 = vrot.slane %v78_v25, %v102_v24  ;;  %v111_v36 = vrot.slane %v80_v26, %v102_v24  ;;  %v493_v26 = vld [vmem:[%s1131_s10 + $0x20] sm:$0xff] }
  0x94   :  { %v58_v27 = vpop.xlane.xlu0 %57  ;;  %v64_v28 = vpop.xlane.xlu1 %63 }
  0x95   :  { %v79_v29 = vmul.f32 0.015625, %v58_v27  ;;  %v81_v30 = vmul.f32 0.015625, %v64_v28  ;;  %v494_v27 = vld [vmem:[%s1131_s10 + $0x28] sm:$0xff] }
  0x96   :  { %v769_v28 = vpack.c.bf16 %v494_v27, %v493_v26  ;;  %617 = vst.msk [vmem:[%s1134_s13 + $0x20] sm:$0xff] %vm207_vm6, %v493_v26  ;;  %618 = vst.msk [vmem:[%s1134_s13 + $0x28] sm:$0xff] %vm207_vm6, %v494_v27 }
  0x97   :  { %v107_v34 = vrot.slane %v79_v29, %v102_v24  ;;  %v115_v35 = vrot.slane %v81_v30, %v102_v24 }
  0x98   :  { %v67_v41 = vpop.xlane.xlu0 %66  ;;  %v70_v42 = vpop.xlane.xlu1 %69  ;;  %771 = vmatpush3.bf16.xpose.msk.msra.mxu1 %vm1010_vm7, %v769_v28 }
  0x99   :  { %v117_v37 = vsel %vm116_vm2, %v107_v34, %v103_v33  ;;  %v82_v43 = vmul.f32 0.015625, %v67_v41  ;;  %v83_v44 = vmul.f32 0.015625, %v70_v42  ;;  %772 = vmatprep.subr.bf16.mxu1 %v836_v18 }
  0x9a   :  { %v119_v39 = vsel %vm118_vm3, %v111_v36, %v117_v37 }
  0x9b   :  { %v121_v40 = vsel %vm120_vm4, %v115_v35, %v119_v39  ;;  %v304_v45 = vrot.slane %v82_v43, %v102_v24  ;;  %v308_v46 = vrot.slane %v83_v44, %v102_v24  ;;  %v663_v35 = vld [vmem:[%s1130_s9] ss:$0 sm:$0xff] }
  0x9c   :  { %700 = vmatmul.mubr.msk.f32.vlgmr.msra.gmra.mrb[0].mxu0 %vm122_vm5, %v121_v40  ;;  %v73_v47 = vpop.xlane.xlu0 %72  ;;  %v76_v52 = vpop.xlane.xlu1 %75 }
  0x9d   :  { %750 = vmatpush3.bf16.msra.mxu0 %v749_v38  ;;  %710 = vmatprep.mubr.msk.f32.mxu0 %vm835_vm1, %v834_v9  ;;  %v317_v48 = vsel %vm116_vm2, %v308_v46, %v304_v45  ;;  %v84_v49 = vmul.f32 0.015625, %v73_v47  ;;  %v85_v53 = vmul.f32 0.015625, %v76_v52  ;;  %v495_v29 = vld [vmem:[%s1131_s10 + $0x30] sm:$0xff]  ;;  %v496_v30 = vld [vmem:[%s1131_s10 + $0x38] sm:$0xff] }
  0x9e   :  { %751 = vmatprep.subr.bf16.mxu0 %v836_v18  ;;  %619 = vst.msk [vmem:[%s1134_s13 + $0x30] sm:$0xff] %vm207_vm6, %v495_v29  ;;  %620 = vst.msk [vmem:[%s1134_s13 + $0x38] sm:$0xff] %vm207_vm6, %v496_v30  ;;  %v773_v31 = vpack.c.bf16 %v496_v30, %v495_v29 }
  0x9f   :  { %v312_v50 = vrot.slane %v84_v49, %v102_v24  ;;  %v316_v57 = vrot.slane %v85_v53, %v102_v24 }
  0xa0   :  { %775 = vmatpush3.bf16.xpose.msk.msra.mxu1 %vm1010_vm7, %v773_v31 }
  0xa1   :  { %v318_v51 = vsel %vm118_vm3, %v312_v50, %v317_v48  ;;  %753 = vmatpush3.bf16.msra.mxu0 %v752_v56 }
  0xa2   :  { %713 = vmatprep.subr.mxu0 %v834_v9  ;;  %v319_v58 = vsel %vm120_vm4, %v316_v57, %v318_v51 }
 0x16f   :  { %v191_v60 = vpop.f32.mrb[0].mxu0 }
 0x170   :  { %v192_v61 = vadd.f32 %v657_v59, %v191_v60  ;;  %v701_v62 = vpop.f32.mrb[1].mxu0 }
 0x172   :  { %v195_v63 = vmax.f32 %v192_v61, 0.0 }
 0x174   :  { %711 = vmatmul.mubr.msk.f32.vlgmr.msra.gmra.mrb[2].mxu0 %vm207_vm6, %v195_v63 }
 0x175   :  { %714 = vmatpush3.msra.mxu0 %v289_v0  ;;  %715 = vmatprep.mubr.msk.f32.mxu0 %vm835_vm1, %v834_v9 }
 0x176   :  { %754 = vmatprep.subr.bf16.mxu0 %v836_v18 }
 0x178   :  { %716 = vmatmul.mubr.msk.f32.vlgmr.msra.gmra.mrb[4].mxu0 %vm122_vm5, %v319_v58 }
 0x179   :  { %726 = vmatprep.mubr.msk.f32.mxu0 %vm835_vm1, %v834_v9  ;;  %756 = vmatpush3.bf16.msra.mxu0 %v755_v3 }
 0x17a   :  { %757 = vmatprep.subr.bf16.mxu0 %v836_v18 }
 0x17d   :  { %759 = vmatpush3.bf16.msra.mxu0 %v758_v6 }
 0x247   :  { %v277_v15 = vpop.f32.mrb[2].mxu0 }
 0x248   :  { %v278_v16 = vadd.f32 %v659_v14, %v277_v15  ;;  %v712_v17 = vpop.f32.mrb[3].mxu0 }
 0x24a   :  { %v281_v20 = vmul.f32 %v278_v16, %v278_v16 }
 0x24b   :  { %v388_v21 = vpop.f32.mrb[4].mxu0 }
 0x24c   :  { %v389_v22 = vadd.f32 %v661_v19, %v388_v21  ;;  %v717_v23 = vpop.f32.mrb[5].mxu0  ;;  %v283_v24 = vsel %vm282_vm8, %v281_v20, 0.0 }
 0x24d   :  { %284 = vadd.xlane.f32.xlu0 %v283_v24 }
 0x24e   :  { %v392_v25 = vmax.f32 %v389_v22, 0.0 }
 0x250   :  { %727 = vmatmul.mubr.msk.f32.vlgmr.msra.gmra.mrb[6].mxu0 %vm207_vm6, %v392_v25 }
 0x2da   :  { %v285_v18 = vpop.xlane.xlu0 %284 }
 0x2db   :  { %v286_v32 = vmax.f32 %v285_v18, 1e-24 }
 0x2dd   :  { %782 = vrsqrt.f32 %v286_v32 }
 0x2e7   :  { %v783_v33 = vpop.eup %782 }
 0x2e8   :  { %v288_v34 = vmul.f32 %v783_v33, %v278_v16 }
 0x2ea   :  { %746 = vmatmul.mubr.msk.f32.vlgmr.msra.gmra.mrb[0].mxu1 %vm207_vm6, %v288_v34  ;;  %484 = vst.msk [vmem:[#allocation5] sm:$0xf] %vm282_vm8, %v288_v34 }
 0x323   :  { %v473_v36 = vpop.f32.mrb[6].mxu0 }
 0x324   :  { %v474_v37 = vadd.f32 %v663_v35, %v473_v36  ;;  %v728_v38 = vpop.f32.mrb[7].mxu0 }
 0x326   :  { %v477_v39 = vmul.f32 %v474_v37, %v474_v37 }
 0x328   :  { %v478_v40 = vsel %vm282_vm8, %v477_v39, 0.0 }
 0x329   :  { %479 = vadd.xlane.f32.xlu1 %v478_v40 }
 0x3b6   :  { %v480_v41 = vpop.xlane.xlu1 %479 }
 0x3b7   :  { %v481_v42 = vmax.f32 %v480_v41, 1e-24 }
 0x3b9   :  { %784 = vrsqrt.f32 %v481_v42 }
 0x3bd   :  { %v590_v43 = vpop.f32.mrb[0].mxu1 }
 0x3be   :  { %v598_v44 = vmul.f32 1.4285715, %v590_v43  ;;  %v747_v45 = vpop.f32.mrb[1].mxu1 }
 0x3c0   :  { %600 = vrot.lane.b32.xlu1 %v598_v44, %s837_s16 }
 0x3c3   :  { %v785_v46 = vpop.eup %784 }
 0x3c4   :  { %v483_v47 = vmul.f32 %v785_v46, %v474_v37 }
 0x3c6   :  { %v485_v48 = vmul.f32 %v483_v47, %v288_v34  ;;  %623 = vst.msk [vmem:[%s622_s4] sm:$0xf] %vm282_vm8, %v483_v47 }
 0x3c8   :  { %v486_v49 = vsel %vm282_vm8, %v485_v48, 0.0 }
 0x3c9   :  { %487 = vadd.xlane.f32.xlu0 %v486_v49 }
 0x3ca   :  { %797 = shalt.err (!%p794_p4)
}
 0x3cb   :  { %s798_s0 = scalar_lea.hbm %s1133_s12, 64 }
 0x3cc   :  { %p799_p5 = scmp.ne.s32.totalorder %s1133_s12, %s798_s0  ;;  %p802_p6 = scmp.lt.u32.totalorder %s798_s0, %s1133_s12 }
 0x3ce   :  { %p804_p7 = pnand %p802_p6, %p799_p5 }
 0x3d0   :  { %807 = shalt.err (!%p804_p7)
}
 0x3d1   :  { %643 = dma.vmem_to_hbm [thread:$0]  %s641_s20, 64, %s1133_s12, [#allocation6]   ;;  %vm596_vm9 = vcmask 3072   ;;  %vm603_vm10 = vcmask 527368  }
 0x3d2   :  { %s839_s1 = smov [#allocation3]  }
 0x3d3   :  { %s630_s25 = sshll.u32 %s839_s1, 4  ;;  %s631_s25 = int_to_ptr.vmem [resolvable:$true] %s630_s25 }
 0x3d4   :  { %s808_s26 = scalar_lea.vmem %s631_s25, 64  ;;  %p813_p9 = scmp.lt.s32.totalorder %s631_s25, %s631_s25 }
 0x3d5   :  { %p809_p8 = scmp.ne.s32.totalorder %s631_s25, %s808_s26  ;;  %p814_p10 = scmp.lt.s32.totalorder %s808_s26, %s808_s26 }
 0x3d7   :  { %p815_p11 = por %p814_p10, %p813_p9 }
 0x3d9   :  { %p816_p12 = pnand %p815_p11, %p809_p8 }
 0x432   :  { %v601_v52 = vpop.permute.xlu1 %600 }
 0x456   :  { %v488_v50 = vpop.xlane.xlu0 %487 }
 0x457   :  { %v595_v51 = vmul.f32 1.4285715, %v488_v50 }
 0x459   :  { %597 = vst.msk [vmem:[#allocation3] sm:$0xf] %vm596_vm9, %v595_v51 }
 0x45a   :  { %604 = vst.msk [vmem:[#allocation3] sm:$0xf] %vm603_vm10, %v601_v52 }
 0x45b   :  { %819 = shalt.err (!%p816_p12)
}
 0x45c   :  { %s820_s12 = scalar_lea.hbm %s1132_s11, 64 }
 0x45d   :  { %p821_p13 = scmp.ne.s32.totalorder %s1132_s11, %s820_s12  ;;  %p824_p0 = scmp.lt.u32.totalorder %s820_s12, %s1132_s11 }
 0x45f   :  { %p826_p1 = pnand %p824_p0, %p821_p13 }
 0x461   :  { %829 = shalt.err (!%p826_p1)
}
 0x462   :  { %633 = dma.vmem_to_hbm [thread:$0]  %s631_s25, 64, %s1132_s11, [#allocation4]  }
 0x463   :  { %830 = dma.done.wait [#allocation4], 64  }
 0x464   :  { %831 = vsyncadd [#allocation4], 4294967232 }
 0x465   :  { %832 = dma.done.wait [#allocation6], 64  }
 0x466   :  { %833 = vsyncadd [#allocation6], 4294967232 }
 0x467   :  { %654 = vsyncpa [#allocation4], 1 }
 0x468   :  { %655 = vsyncpa [#allocation6], 1 }

</bundles_post_ra>
